<compile_context>
chip_gen: v6e
topology: v6e:2x2x1
jax: 0.10.0
libtpu: 0.0.40
codegen_flags: <defaults>
</compile_context>

<pallas_src>
import functools

import jax
import jax.numpy as jnp
import numpy as np
from jax.experimental import pallas as pl
from jax.experimental.pallas import tpu as pltpu

# bf16 weights/activations on the MXU (f32 accumulation + epilogues).  Set to
# jnp.float32 for bit-closer agreement with the f32 PyTorch module.
MXU_DTYPE = jnp.bfloat16


# ------------------------- pltpu.roll convention probe -----------------------

def _roll_is_np_convention():
    """One-time probe: does pltpu.roll match np.roll (out[j] == x[(j-shift)%n])?

    The answer only selects a static shift constant for the pool pair-max, so
    the kernel is correct regardless of the rotate convention."""
    n = 256

    def kernel(x_ref, o_ref):
        o_ref[...] = pltpu.roll(x_ref[...], shift=1, axis=1)

    x = jnp.broadcast_to(jnp.arange(n, dtype=jnp.float32), (8, n))
    out = pl.pallas_call(
        kernel, out_shape=jax.ShapeDtypeStruct((8, n), jnp.float32))(x)
    v = float(out[0, 0])
    if v == float(n - 1):
        return True
    if v == 1.0:
        return False
    raise ValueError(f"unexpected pltpu.roll probe value: {v}")


def _left_shift_amount(k, n, np_convention):
    """Static non-negative shift s so pltpu.roll(x, s, axis)[j] == x[(j+k)%n]."""
    return (n - k) % n if np_convention else k


# ------------------------------ fused kernel ---------------------------------

def _simple_cnn_kernel(x_ref, w1_ref, b1_ref, rs1_ref, cs1_ref,
                       w2_ref, b2_ref, rs2_ref, a1_ref, bf1_ref,
                       w3_ref, b3_ref, o_ref, *, wshift1, wshift2):
    """Entire SimpleCNN forward for one image; all weights VMEM-resident.

    x_ref : (1, 28, 90)   concat over kh of the zero-padded image rows
    w1_ref: (90, 896)     conv1 banded weight (kw baked in), K=90 single matmul
    rs1   : (2, 16, 28)   even/odd row selectors with zero top/bottom rows
    cs1   : (896, 512)    even-col compaction written at conv2's padded offset
    w2_ref: (3, 512, 896) conv2 banded weight (one band per kh)
    rs2   : (2, 7, 14)    even/odd row selectors for pool 2
    a1    : (7, 896, 128) fc1 weight with pool-2 compaction + CHW permute folded in
    w3/b3 : (128, 128)/(1, 128) fc2, lane-padded to 128 output columns
    o_ref : (1, 1, 128)   lane-padded logits
    """
    cdt = w1_ref.dtype                                     # MXU compute dtype

    # ---- conv1 (1 -> 32 ch) as ONE K=90 matmul + bias + ReLU ---------------
    y1 = jnp.dot(x_ref[0].astype(cdt), w1_ref[...],
                 preferred_element_type=jnp.float32)        # (28, 28*32)
    y1 = jnp.maximum(y1 + b1_ref[...], 0.0).astype(cdt)

    # ---- 2x2 max-pool #1, emitted directly in conv2's padded layout --------
    # rows: two tiny selector matmuls (all-zero first/last selector rows give
    # conv2's vertical zero padding for free).
    r1 = jnp.maximum(
        jnp.dot(rs1_ref[0], y1, preferred_element_type=jnp.float32),
        jnp.dot(rs1_ref[1], y1, preferred_element_type=jnp.float32))  # (16, 896)
    # cols: XLU lane roll + VPU max puts the w-pair max on the even group,
    # then ONE 0/1 selector compacts AND shifts by 32 lanes (horizontal pad).
    m1 = jnp.maximum(r1, pltpu.roll(r1, shift=wshift1, axis=1))
    xp2 = jnp.dot(m1.astype(cdt), cs1_ref[...],
                  preferred_element_type=jnp.float32)                 # (16, 512)

    # ---- conv2 (32 -> 64 ch): 3 banded matmuls over the kh shifts ----------
    y2 = jnp.dot(xp2[0:14, :].astype(cdt), w2_ref[0],
                 preferred_element_type=jnp.float32)
    y2 = y2 + jnp.dot(xp2[1:15, :].astype(cdt), w2_ref[1],
                      preferred_element_type=jnp.float32)
    y2 = y2 + jnp.dot(xp2[2:16, :].astype(cdt), w2_ref[2],
                      preferred_element_type=jnp.float32)             # (14, 896)
    y2 = jnp.maximum(y2 + b2_ref[...], 0.0).astype(cdt)

    # ---- 2x2 max-pool #2: rows via selectors, cols via roll + max ----------
    r2 = jnp.maximum(
        jnp.dot(rs2_ref[0], y2, preferred_element_type=jnp.float32),
        jnp.dot(rs2_ref[1], y2, preferred_element_type=jnp.float32))  # (7, 896)
    m2 = jnp.maximum(r2, pltpu.roll(r2, shift=wshift2, axis=1))

    # ---- fc1 + ReLU: pool-2 column compaction, NHWC->CHW flatten permutation
    # and Linear(3136,128) are all folded into a1 (zero rows kill the odd /
    # wrapped lanes of m2), so no in-kernel flatten/reshape is needed. --------
    h = bf1_ref[...]                                                  # (1, 128)
    for r in range(7):
        h = h + jnp.dot(m2[r:r + 1, :].astype(cdt), a1_ref[r],
                        preferred_element_type=jnp.float32)
    h = jnp.maximum(h, 0.0).astype(cdt)

    # ---- fc2 (output columns lane-padded to 128) ----------------------------
    logits = jnp.dot(h, w3_ref[...],
                     preferred_element_type=jnp.float32) + b3_ref[...]
    o_ref[0] = logits.astype(o_ref.dtype)


def _resident(a):
    """BlockSpec for an operand kept resident (same block) across the grid."""
    zeros = (0,) * a.ndim
    return pl.BlockSpec(a.shape, lambda b, _z=zeros: _z)


def simple_cnn_forward(x_nchw, params, num_classes, np_roll):
    """Forward pass matching SimpleCNN.forward.  x_nchw: (B, 1, 28, 28) f32."""
    B = x_nchw.shape[0]
    # conv1's K=90 LHS: pad the image and concatenate the 3 kh row shifts
    # (the kw shifts live in the banded weight).  ~10 KB/image of XLA prep.
    xp = jnp.pad(x_nchw[:, 0, :, :], ((0, 0), (1, 1), (1, 1)))        # (B,30,30)
    lhs1 = jnp.concatenate(
        [xp[:, 0:28, :], xp[:, 1:29, :], xp[:, 2:30, :]], axis=-1)    # (B,28,90)

    kernel = functools.partial(
        _simple_cnn_kernel,
        wshift1=_left_shift_amount(32, 28 * 32, np_roll),   # pool1 pair stride
        wshift2=_left_shift_amount(64, 14 * 64, np_roll))   # pool2 pair stride

    weights = [params[k] for k in
               ("w1", "b1", "rs1", "cs1", "w2", "b2", "rs2",
                "a1", "bf1", "w3", "b3")]

    # NOTE: for batch >= 128, stack several images into the matmul M dimension
    # (and row-tile the fc part) instead of one image per grid step.
    out = pl.pallas_call(
        kernel,
        out_shape=jax.ShapeDtypeStruct((B, 1, 128), jnp.float32),
        grid=(B,),
        in_specs=[pl.BlockSpec((1, 28, 90), lambda b: (b, 0, 0))]
                 + [_resident(w) for w in weights],
        out_specs=pl.BlockSpec((1, 1, 128), lambda b: (b, 0, 0)),
        compiler_params=pltpu.CompilerParams(
            # Tiny batch: keep the whole grid on one core so the resident
            # weights are DMA'd once (v7x has 2 TCs); shard for larger batches.
            dimension_semantics=("arbitrary",) if B <= 4 else ("parallel",),
            vmem_limit_bytes=40 * 1024 * 1024),
    )(lhs1, *weights)
    return out.reshape(B, 128)[:, :num_classes]


# -------------------------- parameter preparation ----------------------------

def _banded_conv_weight(w_oihw, w_out):
    """PyTorch (Cout, Cin, 3, 3) conv weight -> (3, (w_out+2)*Cin, w_out*Cout),
    band[kh][(w+kw)*Cin + ci, w*Cout + co] = w_oihw[co, ci, kh, kw]."""
    cout, cin = int(w_oihw.shape[0]), int(w_oihw.shape[1])
    w = np.asarray(w_oihw).transpose(2, 3, 1, 0)            # (kh, kw, cin, cout)
    band = np.zeros((3, (w_out + 2) * cin, w_out * cout), np.float32)
    for kh in range(3):
        for kw in range(3):
            for wo in range(w_out):
                band[kh, (wo + kw) * cin:(wo + kw + 1) * cin,
                     wo * cout:(wo + 1) * cout] = w[kh, kw]
    return band


def _row_pool_select(h, pad=False):
    """0/1 row selectors for 2x2 pooling: [0] picks even rows, [1] odd rows.
    With pad=True the result has all-zero first/last rows -> vertical padding."""
    h2, off = h // 2, (1 if pad else 0)
    r = np.zeros((2, h2 + 2 * off, h), np.float32)
    r[0, off + np.arange(h2), 2 * np.arange(h2)] = 1.0
    r[1, off + np.arange(h2), 2 * np.arange(h2) + 1] = 1.0
    return r


def _col_pool_select_padded(w, c):
    """(w*c, (w//2+2)*c) 0/1 selector: after roll+max the pooled value for
    output column q sits at lane 2q*c + ch; map it to lane (q+1)*c + ch of the
    next conv's padded row (first/last c lanes stay zero = horizontal pad)."""
    w2 = w // 2
    s = np.zeros((w * c, (w2 + 2) * c), np.float32)
    eye = np.eye(c, dtype=np.float32)
    for q in range(w2):
        s[2 * q * c:(2 * q + 1) * c, (q + 1) * c:(q + 2) * c] = eye
    return s


def _fc1_folded(fc1_w):
    """Fold the pool-2 even-column compaction and the CHW-flatten permutation
    into fc1: A[p, 2q*64 + ch, n] = fc1[n, ch*49 + p*7 + q]; other rows zero."""
    f = np.asarray(fc1_w).reshape(128, 64, 7, 7)             # (n, c, h, w)
    a = np.zeros((7, 14 * 64, 128), np.float32)
    for p in range(7):
        for q in range(7):
            a[p, 2 * q * 64:2 * q * 64 + 64, :] = f[:, :, p, q].T
    return a


def init_raw_params(key, num_classes):
    """Deterministic synthetic parameters with the PyTorch module's shapes."""
    ks = jax.random.split(key, 8)
    s = 0.05
    return {
        "conv1_w": jax.random.normal(ks[0], (32, 1, 3, 3), jnp.float32) * s,
        "conv1_b": jax.random.normal(ks[1], (32,), jnp.float32) * s,
        "conv2_w": jax.random.normal(ks[2], (64, 32, 3, 3), jnp.float32) * s,
        "conv2_b": jax.random.normal(ks[3], (64,), jnp.float32) * s,
        "fc1_w": jax.random.normal(ks[4], (128, 64 * 7 * 7), jnp.float32) * s,
        "fc1_b": jax.random.normal(ks[5], (128,), jnp.float32) * s,
        "fc2_w": jax.random.normal(ks[6], (num_classes, 128), jnp.float32) * s,
        "fc2_b": jax.random.normal(ks[7], (num_classes,), jnp.float32) * s,
    }


def prepare_params(raw, num_classes):
    """Build the fused kernel's resident weight set from PyTorch-shaped params.
    Total ~5.5 MB in bf16 (~10.5 MB f32) -> fits VMEM on v5e/v6e/v7x."""
    dt = MXU_DTYPE

    band1 = _banded_conv_weight(raw["conv1_w"], 28)          # (3, 30, 896)
    w1 = band1.reshape(3 * 30, 28 * 32)                      # stacked: K = 90
    band2 = _banded_conv_weight(raw["conv2_w"], 14)          # (3, 512, 896)

    w3 = np.zeros((128, 128), np.float32)                    # lane-padded fc2
    w3[:, :num_classes] = np.asarray(raw["fc2_w"]).T
    b3 = np.zeros((1, 128), np.float32)
    b3[0, :num_classes] = np.asarray(raw["fc2_b"])

    return {
        "w1": jnp.asarray(w1, dt),
        "b1": jnp.asarray(np.tile(np.asarray(raw["conv1_b"]), 28).reshape(1, -1)),
        "rs1": jnp.asarray(_row_pool_select(28, pad=True), dt),    # (2, 16, 28)
        "cs1": jnp.asarray(_col_pool_select_padded(28, 32), dt),   # (896, 512)
        "w2": jnp.asarray(band2, dt),
        "b2": jnp.asarray(np.tile(np.asarray(raw["conv2_b"]), 14).reshape(1, -1)),
        "rs2": jnp.asarray(_row_pool_select(14, pad=False), dt),   # (2, 7, 14)
        "a1": jnp.asarray(_fc1_folded(raw["fc1_w"]), dt),          # (7, 896, 128)
        "bf1": jnp.asarray(raw["fc1_b"]).reshape(1, 128),
        "w3": jnp.asarray(w3, dt),
        "b3": jnp.asarray(b3),
    }


# ------------------------------ XLA reference ---------------------------------

def reference_forward(x_nchw, raw):
    """Pure-XLA f32 reference of the PyTorch module (correctness check)."""
    dn = ("NCHW", "OIHW", "NCHW")
    y = jax.lax.conv_general_dilated(x_nchw, raw["conv1_w"], (1, 1), "SAME",
                                     dimension_numbers=dn)
    y = jax.nn.relu(y + raw["conv1_b"][None, :, None, None])
    y = jax.lax.reduce_window(y, -jnp.inf, jax.lax.max,
                              (1, 1, 2, 2), (1, 1, 2, 2), "VALID")
    y = jax.lax.conv_general_dilated(y, raw["conv2_w"], (1, 1), "SAME",
                                     dimension_numbers=dn)
    y = jax.nn.relu(y + raw["conv2_b"][None, :, None, None])
    y = jax.lax.reduce_window(y, -jnp.inf, jax.lax.max,
                              (1, 1, 2, 2), (1, 1, 2, 2), "VALID")
    f = y.reshape(y.shape[0], -1)
    h = jax.nn.relu(f @ raw["fc1_w"].T + raw["fc1_b"])
    return h @ raw["fc2_w"].T + raw["fc2_b"]


# --------------------------------- main ---------------------------------------

if __name__ == "__main__":
    num_classes = 10
    key = jax.random.PRNGKey(0)
    k_x, k_p = jax.random.split(key)

    # MNIST-like shape implied by the module: 28x28 -> pool -> 14 -> pool -> 7.
    x = jax.random.normal(k_x, (2, 1, 28, 28), jnp.float32)
    raw = init_raw_params(k_p, num_classes)
    params = prepare_params(raw, num_classes)

    np_roll = _roll_is_np_convention()
    fwd = jax.jit(functools.partial(
        simple_cnn_forward, num_classes=num_classes, np_roll=np_roll))
    out = jax.block_until_ready(fwd(x, params))

    assert out.shape == (2, num_classes), out.shape
    assert out.dtype == jnp.float32

    # Cross-check against the pure-XLA f32 reference of the PyTorch forward.
    ref = jax.block_until_ready(jax.jit(reference_forward)(x, raw))
    err = float(jnp.max(jnp.abs(out - ref)))
    # bf16 weights/activations (f32 accumulation) vs a pure f32 reference.
    tol = 1e-2 if MXU_DTYPE == jnp.float32 else 5e-2
    assert err < tol, f"max abs err vs reference: {err}"

    print("KERNEL_OK")
</pallas_src>

<mosaic_0001>
module attributes {stable_mosaic.version = 11 : i64} {
  func.func @kernel(%arg0: memref<8x256xf32, #tpu.memory_space<vmem>>, %arg1: memref<8x256xf32, #tpu.memory_space<vmem>>) attributes {dimension_semantics = [], scalar_prefetch = 0 : i64, scratch_operands = 0 : i64, tpu.core_type = #tpu.core_type<tc>} {
    %c0 = arith.constant 0 : index
    %c0_0 = arith.constant 0 : index
    %0 = vector.load %arg0[%c0, %c0_0] : memref<8x256xf32, #tpu.memory_space<vmem>>, vector<8x256xf32>
    %c1_i32 = arith.constant 1 : i32
    %1 = tpu.dynamic_rotate %0 by %c1_i32 dim 1 : vector<8x256xf32>, i32 -> vector<8x256xf32>
    %c0_1 = arith.constant 0 : index
    %c0_2 = arith.constant 0 : index
    %2 = vector.load %arg1[%c0_1, %c0_2] : memref<8x256xf32, #tpu.memory_space<vmem>>, vector<8x256xf32>
    tpu.vector_store %arg1[%c0_1, %c0_2], %1 {strides = array<i32>} : memref<8x256xf32, #tpu.memory_space<vmem>>, vector<8x256xf32>,
    return
  }
}

</mosaic_0001>

<bundles_post_ra>
// kernel: tpu_custom_call.1
= control target key start
LH: loop header
LB: loop body
LE: loop exit
PB: predicated region body
PF: predicated region fallthrough
CT: control target
= control target key end

     0   :  { %6 = vsyncpa [#allocation3], 0  ;;  %s115_s0 = inlined_call_operand.hbm [shape: f32[8,256], index: 0, kind: input, shape index: {}]   ;;  %s116_s1 = inlined_call_operand.hbm [shape: f32[8,256], index: 1, kind: output, shape index: {}]  }
   0x1   :  { %7 = vsyncpa [#allocation4], 0  ;;  %s96_s6 = smov [#allocation2]  }
   0x2   :  { %s14_s7 = sshll.u32 %s96_s6, 4  ;;  %s15_s7 = int_to_ptr.vmem [resolvable:$true] %s14_s7 }
   0x3   :  { %s60_s8 = scalar_lea.vmem %s15_s7, 256  ;;  %p65_p1 = scmp.lt.s32.totalorder %s15_s7, %s15_s7 }
   0x4   :  { %p61_p0 = scmp.ne.s32.totalorder %s15_s7, %s60_s8  ;;  %p66_p2 = scmp.lt.s32.totalorder %s60_s8, %s60_s8 }
   0x6   :  { %p67_p3 = por %p66_p2, %p65_p1 }
   0x8   :  { %p68_p4 = pnand %p67_p3, %p61_p0 }
   0xa   :  { %71 = shalt.err (!%p68_p4)
}
   0xb   :  { %17 = dma.hbm_to_vmem [thread:$0]  %s115_s0, 256, %s15_s7, [#allocation3]  }
   0xc   :  { %92 = dma.done.wait [#allocation3], 256  }
   0xd   :  { %93 = vsyncadd [#allocation3], 4294967040  ;;  %v21_v0 = vld [vmem:[#allocation2] sm:$0xff]  ;;  %s97_s11 = smov 1   ;;  %v22_v1 = vld [vmem:[#allocation2 + $0x8] sm:$0xff]  ;;  %v27_v2 = vlaneseq  ;;  %s98_s12 = smov [#allocation5]  }
   0xe   :  { %23 = vrot.lane.b32.xlu0 %v21_v0, %s97_s11  ;;  %s40_s13 = sshll.u32 %s98_s12, 4  ;;  %s41_s13 = int_to_ptr.vmem [resolvable:$true] %s40_s13 }
   0xf   :  { %v28_v3 = vand.u32 127, %v27_v2  ;;  %s72_s0 = scalar_lea.vmem %s41_s13, 256  ;;  %p77_p6 = scmp.lt.s32.totalorder %s41_s13, %s41_s13 }
  0x10   :  { %p73_p5 = scmp.ne.s32.totalorder %s41_s13, %s72_s0  ;;  %p78_p7 = scmp.lt.s32.totalorder %s72_s0, %s72_s0 }
  0x11   :  { %vm29_vm0 = vcmp.lt.s32.totalorder %v28_v3, 1 }
  0x12   :  { %25 = vrot.lane.b32.xlu0 %v22_v1, %s97_s11  ;;  %p79_p8 = por %p78_p7, %p77_p6 }
  0x14   :  { %p80_p9 = pnand %p79_p8, %p73_p5 }
  0x80   :  { %v24_v4 = vpop.permute.xlu0 %23 }
  0x84   :  { %v26_v5 = vpop.permute.xlu0 %25 }
  0x85   :  { %v30_v6 = vsel %vm29_vm0, %v24_v4, %v26_v5  ;;  %v31_v7 = vsel %vm29_vm0, %v26_v5, %v24_v4 }
  0x86   :  { %32 = vst [vmem:[#allocation5] sm:$0xff] %v31_v7  ;;  %33 = vst [vmem:[#allocation5 + $0x8] sm:$0xff] %v30_v6 }
  0x87   :  { %83 = shalt.err (!%p80_p9)
}
  0x88   :  { %43 = dma.vmem_to_hbm [thread:$0]  %s41_s13, 256, %s116_s1, [#allocation4]  }
  0x89   :  { %94 = dma.done.wait [#allocation4], 256  }
  0x8a   :  { %95 = vsyncadd [#allocation4], 4294967040 }
  0x8b   :  { %47 = vsyncpa [#allocation3], 1 }
  0x8c   :  { %48 = vsyncpa [#allocation4], 1 }

</bundles_post_ra>
